<compile_context>
chip_gen: v7x
topology: tpu7x:2x2x1
jax: 0.10.0
libtpu: 0.0.40
codegen_flags: <defaults>
</compile_context>

<pallas_src>
import jax
import jax.numpy as jnp
from jax.experimental import pallas as pl
from jax.experimental.pallas import tpu as pltpu

_GRAY_R, _GRAY_G, _GRAY_B = 0.2989, 0.587, 0.114
_LANES = 128
_MAX_TR = 256  # sublane-tile rows; keeps pipelined buffers + spills small (v5e-safe)


def _colorjitter_kernel(f_ref, mean_ref, x_ref, o_ref):
    # f_ref:    SMEM f32[4]  = (brightness_f, contrast_f, saturation_f, hue_f)
    # mean_ref: SMEM f32[N]  = per-image grayscale mean of brightness-adjusted img
    # x_ref/o_ref: VMEM (1, 3, TR, 128) tile (flattened spatial, lane-dense)
    bf = f_ref[0]
    cf = f_ref[1]
    sf = f_ref[2]
    hf = f_ref[3]
    mean = mean_ref[pl.program_id(0)]

    r = x_ref[0, 0, :, :].astype(jnp.float32)
    g = x_ref[0, 1, :, :].astype(jnp.float32)
    b = x_ref[0, 2, :, :].astype(jnp.float32)

    # --- brightness --------------------------------------------------------
    r = jnp.clip(r * bf, 0.0, 1.0)
    g = jnp.clip(g * bf, 0.0, 1.0)
    b = jnp.clip(b * bf, 0.0, 1.0)

    # --- contrast (blend with prefetched per-image grayscale mean) ----------
    off = (1.0 - cf) * mean
    r = jnp.clip(cf * r + off, 0.0, 1.0)
    g = jnp.clip(cf * g + off, 0.0, 1.0)
    b = jnp.clip(cf * b + off, 0.0, 1.0)

    # --- saturation (blend with per-pixel grayscale) -------------------------
    gray = _GRAY_R * r + _GRAY_G * g + _GRAY_B * b
    one_m_sf = 1.0 - sf
    r = jnp.clip(sf * r + one_m_sf * gray, 0.0, 1.0)
    g = jnp.clip(sf * g + one_m_sf * gray, 0.0, 1.0)
    b = jnp.clip(sf * b + one_m_sf * gray, 0.0, 1.0)

    # --- hue: rgb -> hsv (torchvision _rgb2hsv) ------------------------------
    maxc = jnp.maximum(jnp.maximum(r, g), b)
    minc = jnp.minimum(jnp.minimum(r, g), b)
    eqc = maxc == minc
    cr = maxc - minc
    ones = jnp.ones_like(maxc)
    # divides -> one approx reciprocal per denominator (EUP slot) + multiplies
    s = cr * pl.reciprocal(jnp.where(eqc, ones, maxc), approx=True)
    s = jnp.minimum(s, 1.0)  # guard approx-reciprocal overshoot (keeps out in [0,1])
    inv_cr = pl.reciprocal(jnp.where(eqc, ones, cr), approx=True)
    rc = (maxc - r) * inv_cr
    gc = (maxc - g) * inv_cr
    bc = (maxc - b) * inv_cr
    max_r = maxc == r
    max_g = maxc == g
    hr = jnp.where(max_r, bc - gc, 0.0)
    hg = jnp.where(max_g & ~max_r, 2.0 + rc - bc, 0.0)
    hb = jnp.where(~max_g & ~max_r, 4.0 + gc - rc, 0.0)

    # fold the hue shift into a single frac():  h = frac(h_raw/6 + 1 + hf)
    hx = (hr + hg + hb) * (1.0 / 6.0) + (1.0 + hf)
    h = hx - jnp.floor(hx)

    # --- hsv -> rgb (torchvision _hsv2rgb) -----------------------------------
    v = maxc
    h6 = h * 6.0
    i = jnp.floor(h6)  # h in [0,1) -> i in [0,5]; no mod-6 needed
    f = h6 - i
    p = v * (1.0 - s)
    q = v * (1.0 - s * f)
    t = v * (1.0 - s * (1.0 - f))

    is0 = i == 0.0
    is1 = i == 1.0
    is2 = i == 2.0
    is3 = i == 3.0
    is4 = i == 4.0
    r_o = jnp.where(is0, v, jnp.where(is1, q, jnp.where(is2 | is3, p,
                                                        jnp.where(is4, t, v))))
    g_o = jnp.where(is0, t, jnp.where(is1 | is2, v, jnp.where(is3, q, p)))
    b_o = jnp.where(is0 | is1, p, jnp.where(is2, t, jnp.where(is3 | is4, v, q)))

    o_ref[0, 0, :, :] = r_o.astype(o_ref.dtype)
    o_ref[0, 1, :, :] = g_o.astype(o_ref.dtype)
    o_ref[0, 2, :, :] = b_o.astype(o_ref.dtype)


def colorjitter_pallas(img, factors):
    """img: (N, 3, H, W) float in [0, 1] (f32 or bf16); factors: f32[4]."""
    n, c, h, w = img.shape
    assert c == 3, "hue adjustment requires 3-channel RGB input"
    dtype = img.dtype

    # Pre-pass: per-image grayscale mean of the brightness-adjusted image
    # (the contrast reference).  Tiny jnp reduction; fed to the kernel via SMEM.
    bf = factors[0]
    xb = jnp.clip(img.astype(jnp.float32) * bf, 0.0, 1.0)
    gray = _GRAY_R * xb[:, 0] + _GRAY_G * xb[:, 1] + _GRAY_B * xb[:, 2]
    means = jnp.mean(gray, axis=(1, 2)).astype(jnp.float32)  # f32[N]

    # Lane-dense layout: flatten spatial, pad to (rows, 128), tile rows.
    p = h * w
    rows = pl.cdiv(p, _LANES)
    if rows <= _MAX_TR:
        tr = rows                       # full (second-to-last) dim -> always legal
        rows_padded = rows
    else:
        tr = _MAX_TR                    # multiple of 8
        rows_padded = pl.cdiv(rows, tr) * tr
    p_padded = rows_padded * _LANES
    num_tiles = rows_padded // tr

    xf = img.reshape(n, c, p)
    if p_padded != p:
        xf = jnp.pad(xf, ((0, 0), (0, 0), (0, p_padded - p)))
    xt = xf.reshape(n, c, rows_padded, _LANES)

    bytes_per_px = 2 * 3 * jnp.dtype(dtype).itemsize  # read + write, 3 channels
    out = pl.pallas_call(
        _colorjitter_kernel,
        out_shape=jax.ShapeDtypeStruct(xt.shape, dtype),
        grid=(n, num_tiles),
        in_specs=[
            pl.BlockSpec(memory_space=pltpu.MemorySpace.SMEM),      # factors f32[4]
            pl.BlockSpec(memory_space=pltpu.MemorySpace.SMEM),      # means  f32[N]
            pl.BlockSpec((1, c, tr, _LANES), lambda i, t: (i, 0, t, 0)),
        ],
        out_specs=pl.BlockSpec((1, c, tr, _LANES), lambda i, t: (i, 0, t, 0)),
        compiler_params=pltpu.CompilerParams(
            dimension_semantics=("parallel", "parallel"),
            vmem_limit_bytes=32 * 1024 * 1024),
        cost_estimate=pl.CostEstimate(
            flops=130 * n * p,
            transcendentals=2 * n * p,
            bytes_accessed=bytes_per_px * n * p),
    )(factors, means, xt)

    out = out.reshape(n, c, p_padded)
    if p_padded != p:
        out = out[:, :, :p]
    return out.reshape(n, c, h, w)


class MyColorjitterPallas:
    """Mirrors MyColorjitter: jitter args[0], pass the rest through."""

    def __init__(self, brightness=0, contrast=0, saturation=0, hue=0,
                 key=jax.random.PRNGKey(0)):
        kb, kc, ks, kh = jax.random.split(key, 4)

        def _sample(k, strength):
            if strength == 0:
                return 1.0  # identity factor (ColorJitter skips the op)
            lo, hi = max(0.0, 1.0 - strength), 1.0 + strength
            return float(jax.random.uniform(k, (), minval=lo, maxval=hi))

        bf = _sample(kb, brightness)
        cf = _sample(kc, contrast)
        sf = _sample(ks, saturation)
        hf = (0.0 if hue == 0 else
              float(jax.random.uniform(kh, (), minval=-hue, maxval=hue)))
        self.factors = jnp.array([bf, cf, sf, hf], dtype=jnp.float32)

    def __call__(self, *args):
        return [colorjitter_pallas(args[idx], self.factors) if idx == 0
                else args[idx] for idx in range(len(args))]


if __name__ == "__main__":
    key = jax.random.PRNGKey(0)
    k1, k2 = jax.random.split(key)
    # args[0]: RGB image batch in [0, 1], NCHW
    x = jax.random.uniform(k1, (2, 3, 16, 16), dtype=jnp.float32)
    # args[1]: arbitrary passthrough tensor (untouched by forward)
    aux = jax.random.normal(k2, (2, 4, 8), dtype=jnp.float32)

    jitter = MyColorjitterPallas(brightness=0.4, contrast=0.4,
                                 saturation=0.4, hue=0.1)
    outs = jitter(x, aux)
    jax.block_until_ready(outs)

    assert outs[0].shape == x.shape and outs[0].dtype == x.dtype
    assert outs[1] is aux
    assert bool(jnp.all(jnp.isfinite(outs[0])))
    assert bool(jnp.all((outs[0] >= 0.0) & (outs[0] <= 1.0)))
    print("KERNEL_OK")
</pallas_src>

<mosaic_0001>
module attributes {stable_mosaic.version = 11 : i64} {
  func.func @_colorjitter_kernel(%arg0: i32, %arg1: i32, %arg2: memref<4xf32, #tpu.memory_space<smem>>, %arg3: memref<2xf32, #tpu.memory_space<smem>>, %arg4: memref<1x3x2x128xf32, #tpu.memory_space<vmem>>, %arg5: memref<1x3x2x128xf32, #tpu.memory_space<vmem>>) attributes {dimension_semantics = [#tpu.dimension_semantics<parallel>, #tpu.dimension_semantics<parallel>], iteration_bounds = array<i64: 2, 1>, scalar_prefetch = 0 : i64, scratch_operands = 0 : i64, tpu.core_type = #tpu.core_type<tc>, window_params = [{transform_indices = @transform_0, window_bounds = array<i64: 4>}, {transform_indices = @transform_1, window_bounds = array<i64: 2>}, {transform_indices = @transform_2, window_bounds = array<i64: 1, 3, 2, 128>}, {transform_indices = @transform_3, window_bounds = array<i64: 1, 3, 2, 128>}]} {
    %c0 = arith.constant 0 : index
    %0 = memref.load %arg2[%c0] : memref<4xf32, #tpu.memory_space<smem>>
    %c1 = arith.constant 1 : index
    %1 = memref.load %arg2[%c1] : memref<4xf32, #tpu.memory_space<smem>>
    %c2 = arith.constant 2 : index
    %2 = memref.load %arg2[%c2] : memref<4xf32, #tpu.memory_space<smem>>
    %c3 = arith.constant 3 : index
    %3 = memref.load %arg2[%c3] : memref<4xf32, #tpu.memory_space<smem>>
    %4 = arith.index_cast %arg0 : i32 to index
    %5 = memref.load %arg3[%4] : memref<2xf32, #tpu.memory_space<smem>>
    %c0_0 = arith.constant 0 : index
    %c0_1 = arith.constant 0 : index
    %c0_2 = arith.constant 0 : index
    %c0_3 = arith.constant 0 : index
    %6 = vector.load %arg4[%c0_0, %c0_1, %c0_2, %c0_3] : memref<1x3x2x128xf32, #tpu.memory_space<vmem>>, vector<1x1x2x128xf32>
    %7 = vector.shape_cast %6 : vector<1x1x2x128xf32> to vector<2x128xf32>
    %c0_4 = arith.constant 0 : index
    %c1_5 = arith.constant 1 : index
    %c0_6 = arith.constant 0 : index
    %c0_7 = arith.constant 0 : index
    %8 = vector.load %arg4[%c0_4, %c1_5, %c0_6, %c0_7] : memref<1x3x2x128xf32, #tpu.memory_space<vmem>>, vector<1x1x2x128xf32>
    %9 = vector.shape_cast %8 : vector<1x1x2x128xf32> to vector<2x128xf32>
    %c0_8 = arith.constant 0 : index
    %c2_9 = arith.constant 2 : index
    %c0_10 = arith.constant 0 : index
    %c0_11 = arith.constant 0 : index
    %10 = vector.load %arg4[%c0_8, %c2_9, %c0_10, %c0_11] : memref<1x3x2x128xf32, #tpu.memory_space<vmem>>, vector<1x1x2x128xf32>
    %11 = vector.shape_cast %10 : vector<1x1x2x128xf32> to vector<2x128xf32>
    %12 = vector.broadcast %0 : f32 to vector<2x128xf32>
    %13 = arith.mulf %7, %12 : vector<2x128xf32>
    %cst = arith.constant 0.000000e+00 : f32
    %cst_12 = arith.constant 1.000000e+00 : f32
    %14 = vector.broadcast %cst : f32 to vector<2x128xf32>
    %15 = arith.maximumf %14, %13 : vector<2x128xf32>
    %16 = vector.broadcast %cst_12 : f32 to vector<2x128xf32>
    %17 = arith.minimumf %16, %15 : vector<2x128xf32>
    %18 = vector.broadcast %0 : f32 to vector<2x128xf32>
    %19 = arith.mulf %9, %18 : vector<2x128xf32>
    %cst_13 = arith.constant 0.000000e+00 : f32
    %cst_14 = arith.constant 1.000000e+00 : f32
    %20 = vector.broadcast %cst_13 : f32 to vector<2x128xf32>
    %21 = arith.maximumf %20, %19 : vector<2x128xf32>
    %22 = vector.broadcast %cst_14 : f32 to vector<2x128xf32>
    %23 = arith.minimumf %22, %21 : vector<2x128xf32>
    %24 = vector.broadcast %0 : f32 to vector<2x128xf32>
    %25 = arith.mulf %11, %24 : vector<2x128xf32>
    %cst_15 = arith.constant 0.000000e+00 : f32
    %cst_16 = arith.constant 1.000000e+00 : f32
    %26 = vector.broadcast %cst_15 : f32 to vector<2x128xf32>
    %27 = arith.maximumf %26, %25 : vector<2x128xf32>
    %28 = vector.broadcast %cst_16 : f32 to vector<2x128xf32>
    %29 = arith.minimumf %28, %27 : vector<2x128xf32>
    %cst_17 = arith.constant 1.000000e+00 : f32
    %30 = arith.subf %cst_17, %1 : f32
    %31 = arith.mulf %30, %5 : f32
    %32 = vector.broadcast %1 : f32 to vector<2x128xf32>
    %33 = arith.mulf %32, %17 : vector<2x128xf32>
    %34 = vector.broadcast %31 : f32 to vector<2x128xf32>
    %35 = arith.addf %33, %34 : vector<2x128xf32>
    %cst_18 = arith.constant 0.000000e+00 : f32
    %cst_19 = arith.constant 1.000000e+00 : f32
    %36 = vector.broadcast %cst_18 : f32 to vector<2x128xf32>
    %37 = arith.maximumf %36, %35 : vector<2x128xf32>
    %38 = vector.broadcast %cst_19 : f32 to vector<2x128xf32>
    %39 = arith.minimumf %38, %37 : vector<2x128xf32>
    %40 = vector.broadcast %1 : f32 to vector<2x128xf32>
    %41 = arith.mulf %40, %23 : vector<2x128xf32>
    %42 = vector.broadcast %31 : f32 to vector<2x128xf32>
    %43 = arith.addf %41, %42 : vector<2x128xf32>
    %cst_20 = arith.constant 0.000000e+00 : f32
    %cst_21 = arith.constant 1.000000e+00 : f32
    %44 = vector.broadcast %cst_20 : f32 to vector<2x128xf32>
    %45 = arith.maximumf %44, %43 : vector<2x128xf32>
    %46 = vector.broadcast %cst_21 : f32 to vector<2x128xf32>
    %47 = arith.minimumf %46, %45 : vector<2x128xf32>
    %48 = vector.broadcast %1 : f32 to vector<2x128xf32>
    %49 = arith.mulf %48, %29 : vector<2x128xf32>
    %50 = vector.broadcast %31 : f32 to vector<2x128xf32>
    %51 = arith.addf %49, %50 : vector<2x128xf32>
    %cst_22 = arith.constant 0.000000e+00 : f32
    %cst_23 = arith.constant 1.000000e+00 : f32
    %52 = vector.broadcast %cst_22 : f32 to vector<2x128xf32>
    %53 = arith.maximumf %52, %51 : vector<2x128xf32>
    %54 = vector.broadcast %cst_23 : f32 to vector<2x128xf32>
    %55 = arith.minimumf %54, %53 : vector<2x128xf32>
    %cst_24 = arith.constant 2.989000e-01 : f32
    %56 = vector.broadcast %cst_24 : f32 to vector<2x128xf32>
    %57 = arith.mulf %56, %39 : vector<2x128xf32>
    %cst_25 = arith.constant 5.870000e-01 : f32
    %58 = vector.broadcast %cst_25 : f32 to vector<2x128xf32>
    %59 = arith.mulf %58, %47 : vector<2x128xf32>
    %60 = arith.addf %57, %59 : vector<2x128xf32>
    %cst_26 = arith.constant 1.140000e-01 : f32
    %61 = vector.broadcast %cst_26 : f32 to vector<2x128xf32>
    %62 = arith.mulf %61, %55 : vector<2x128xf32>
    %63 = arith.addf %60, %62 : vector<2x128xf32>
    %cst_27 = arith.constant 1.000000e+00 : f32
    %64 = arith.subf %cst_27, %2 : f32
    %65 = vector.broadcast %2 : f32 to vector<2x128xf32>
    %66 = arith.mulf %65, %39 : vector<2x128xf32>
    %67 = vector.broadcast %64 : f32 to vector<2x128xf32>
    %68 = arith.mulf %67, %63 : vector<2x128xf32>
    %69 = arith.addf %66, %68 : vector<2x128xf32>
    %cst_28 = arith.constant 0.000000e+00 : f32
    %cst_29 = arith.constant 1.000000e+00 : f32
    %70 = vector.broadcast %cst_28 : f32 to vector<2x128xf32>
    %71 = arith.maximumf %70, %69 : vector<2x128xf32>
    %72 = vector.broadcast %cst_29 : f32 to vector<2x128xf32>
    %73 = arith.minimumf %72, %71 : vector<2x128xf32>
    %74 = vector.broadcast %2 : f32 to vector<2x128xf32>
    %75 = arith.mulf %74, %47 : vector<2x128xf32>
    %76 = vector.broadcast %64 : f32 to vector<2x128xf32>
    %77 = arith.mulf %76, %63 : vector<2x128xf32>
    %78 = arith.addf %75, %77 : vector<2x128xf32>
    %cst_30 = arith.constant 0.000000e+00 : f32
    %cst_31 = arith.constant 1.000000e+00 : f32
    %79 = vector.broadcast %cst_30 : f32 to vector<2x128xf32>
    %80 = arith.maximumf %79, %78 : vector<2x128xf32>
    %81 = vector.broadcast %cst_31 : f32 to vector<2x128xf32>
    %82 = arith.minimumf %81, %80 : vector<2x128xf32>
    %83 = vector.broadcast %2 : f32 to vector<2x128xf32>
    %84 = arith.mulf %83, %55 : vector<2x128xf32>
    %85 = vector.broadcast %64 : f32 to vector<2x128xf32>
    %86 = arith.mulf %85, %63 : vector<2x128xf32>
    %87 = arith.addf %84, %86 : vector<2x128xf32>
    %cst_32 = arith.constant 0.000000e+00 : f32
    %cst_33 = arith.constant 1.000000e+00 : f32
    %88 = vector.broadcast %cst_32 : f32 to vector<2x128xf32>
    %89 = arith.maximumf %88, %87 : vector<2x128xf32>
    %90 = vector.broadcast %cst_33 : f32 to vector<2x128xf32>
    %91 = arith.minimumf %90, %89 : vector<2x128xf32>
    %92 = arith.maximumf %73, %82 : vector<2x128xf32>
    %93 = arith.maximumf %92, %91 : vector<2x128xf32>
    %94 = arith.minimumf %73, %82 : vector<2x128xf32>
    %95 = arith.minimumf %94, %91 : vector<2x128xf32>
    %96 = arith.cmpf oeq, %93, %95 : vector<2x128xf32>
    %97 = arith.subf %93, %95 : vector<2x128xf32>
    %cst_34 = arith.constant 1.000000e+00 : f32
    %98 = vector.broadcast %cst_34 : f32 to vector<2x128xf32>
    %99 = arith.select %96, %98, %93 : vector<2x128xi1>, vector<2x128xf32>
    %100 = tpu.reciprocal %99 {approx = true} : vector<2x128xf32> -> vector<2x128xf32>
    %101 = arith.mulf %97, %100 : vector<2x128xf32>
    %cst_35 = arith.constant 1.000000e+00 : f32
    %102 = vector.broadcast %cst_35 : f32 to vector<2x128xf32>
    %103 = arith.minimumf %101, %102 : vector<2x128xf32>
    %104 = arith.select %96, %98, %97 : vector<2x128xi1>, vector<2x128xf32>
    %105 = tpu.reciprocal %104 {approx = true} : vector<2x128xf32> -> vector<2x128xf32>
    %106 = arith.subf %93, %73 : vector<2x128xf32>
    %107 = arith.mulf %106, %105 : vector<2x128xf32>
    %108 = arith.subf %93, %82 : vector<2x128xf32>
    %109 = arith.mulf %108, %105 : vector<2x128xf32>
    %110 = arith.subf %93, %91 : vector<2x128xf32>
    %111 = arith.mulf %110, %105 : vector<2x128xf32>
    %112 = arith.cmpf oeq, %93, %73 : vector<2x128xf32>
    %113 = arith.cmpf oeq, %93, %82 : vector<2x128xf32>
    %114 = arith.subf %111, %109 : vector<2x128xf32>
    %cst_36 = arith.constant 0.000000e+00 : f32
    %115 = vector.broadcast %cst_36 : f32 to vector<2x128xf32>
    %116 = arith.select %112, %114, %115 : vector<2x128xi1>, vector<2x128xf32>
    %cst_37 = arith.constant dense<true> : vector<2x128xi1>
    %117 = arith.xori %112, %cst_37 : vector<2x128xi1>
    %118 = arith.andi %113, %117 : vector<2x128xi1>
    %cst_38 = arith.constant 2.000000e+00 : f32
    %119 = vector.broadcast %cst_38 : f32 to vector<2x128xf32>
    %120 = arith.addf %119, %107 : vector<2x128xf32>
    %121 = arith.subf %120, %111 : vector<2x128xf32>
    %cst_39 = arith.constant 0.000000e+00 : f32
    %122 = vector.broadcast %cst_39 : f32 to vector<2x128xf32>
    %123 = arith.select %118, %121, %122 : vector<2x128xi1>, vector<2x128xf32>
    %cst_40 = arith.constant dense<true> : vector<2x128xi1>
    %124 = arith.xori %113, %cst_40 : vector<2x128xi1>
    %cst_41 = arith.constant dense<true> : vector<2x128xi1>
    %125 = arith.xori %112, %cst_41 : vector<2x128xi1>
    %126 = arith.andi %124, %125 : vector<2x128xi1>
    %cst_42 = arith.constant 4.000000e+00 : f32
    %127 = vector.broadcast %cst_42 : f32 to vector<2x128xf32>
    %128 = arith.addf %127, %109 : vector<2x128xf32>
    %129 = arith.subf %128, %107 : vector<2x128xf32>
    %cst_43 = arith.constant 0.000000e+00 : f32
    %130 = vector.broadcast %cst_43 : f32 to vector<2x128xf32>
    %131 = arith.select %126, %129, %130 : vector<2x128xi1>, vector<2x128xf32>
    %132 = arith.addf %116, %123 : vector<2x128xf32>
    %133 = arith.addf %132, %131 : vector<2x128xf32>
    %cst_44 = arith.constant 0.166666672 : f32
    %134 = vector.broadcast %cst_44 : f32 to vector<2x128xf32>
    %135 = arith.mulf %133, %134 : vector<2x128xf32>
    %cst_45 = arith.constant 1.000000e+00 : f32
    %136 = arith.addf %cst_45, %3 : f32
    %137 = vector.broadcast %136 : f32 to vector<2x128xf32>
    %138 = arith.addf %135, %137 : vector<2x128xf32>
    %139 = math.floor %138 : vector<2x128xf32>
    %140 = arith.subf %138, %139 : vector<2x128xf32>
    %cst_46 = arith.constant 6.000000e+00 : f32
    %141 = vector.broadcast %cst_46 : f32 to vector<2x128xf32>
    %142 = arith.mulf %140, %141 : vector<2x128xf32>
    %143 = math.floor %142 : vector<2x128xf32>
    %144 = arith.subf %142, %143 : vector<2x128xf32>
    %cst_47 = arith.constant 1.000000e+00 : f32
    %145 = vector.broadcast %cst_47 : f32 to vector<2x128xf32>
    %146 = arith.subf %145, %103 : vector<2x128xf32>
    %147 = arith.mulf %93, %146 : vector<2x128xf32>
    %148 = arith.mulf %103, %144 : vector<2x128xf32>
    %cst_48 = arith.constant 1.000000e+00 : f32
    %149 = vector.broadcast %cst_48 : f32 to vector<2x128xf32>
    %150 = arith.subf %149, %148 : vector<2x128xf32>
    %151 = arith.mulf %93, %150 : vector<2x128xf32>
    %cst_49 = arith.constant 1.000000e+00 : f32
    %152 = vector.broadcast %cst_49 : f32 to vector<2x128xf32>
    %153 = arith.subf %152, %144 : vector<2x128xf32>
    %154 = arith.mulf %103, %153 : vector<2x128xf32>
    %cst_50 = arith.constant 1.000000e+00 : f32
    %155 = vector.broadcast %cst_50 : f32 to vector<2x128xf32>
    %156 = arith.subf %155, %154 : vector<2x128xf32>
    %157 = arith.mulf %93, %156 : vector<2x128xf32>
    %cst_51 = arith.constant 0.000000e+00 : f32
    %158 = vector.broadcast %cst_51 : f32 to vector<2x128xf32>
    %159 = arith.cmpf oeq, %143, %158 : vector<2x128xf32>
    %cst_52 = arith.constant 1.000000e+00 : f32
    %160 = vector.broadcast %cst_52 : f32 to vector<2x128xf32>
    %161 = arith.cmpf oeq, %143, %160 : vector<2x128xf32>
    %cst_53 = arith.constant 2.000000e+00 : f32
    %162 = vector.broadcast %cst_53 : f32 to vector<2x128xf32>
    %163 = arith.cmpf oeq, %143, %162 : vector<2x128xf32>
    %cst_54 = arith.constant 3.000000e+00 : f32
    %164 = vector.broadcast %cst_54 : f32 to vector<2x128xf32>
    %165 = arith.cmpf oeq, %143, %164 : vector<2x128xf32>
    %cst_55 = arith.constant 4.000000e+00 : f32
    %166 = vector.broadcast %cst_55 : f32 to vector<2x128xf32>
    %167 = arith.cmpf oeq, %143, %166 : vector<2x128xf32>
    %168 = arith.ori %163, %165 : vector<2x128xi1>
    %169 = arith.select %167, %157, %93 : vector<2x128xi1>, vector<2x128xf32>
    %170 = arith.select %168, %147, %169 : vector<2x128xi1>, vector<2x128xf32>
    %171 = arith.select %161, %151, %170 : vector<2x128xi1>, vector<2x128xf32>
    %172 = arith.select %159, %93, %171 : vector<2x128xi1>, vector<2x128xf32>
    %173 = arith.ori %161, %163 : vector<2x128xi1>
    %174 = arith.select %165, %151, %147 : vector<2x128xi1>, vector<2x128xf32>
    %175 = arith.select %173, %93, %174 : vector<2x128xi1>, vector<2x128xf32>
    %176 = arith.select %159, %157, %175 : vector<2x128xi1>, vector<2x128xf32>
    %177 = arith.ori %159, %161 : vector<2x128xi1>
    %178 = arith.ori %165, %167 : vector<2x128xi1>
    %179 = arith.select %178, %93, %151 : vector<2x128xi1>, vector<2x128xf32>
    %180 = arith.select %163, %157, %179 : vector<2x128xi1>, vector<2x128xf32>
    %181 = arith.select %177, %147, %180 : vector<2x128xi1>, vector<2x128xf32>
    %c0_56 = arith.constant 0 : index
    %c0_57 = arith.constant 0 : index
    %c0_58 = arith.constant 0 : index
    %c0_59 = arith.constant 0 : index
    %182 = vector.load %arg5[%c0_56, %c0_57, %c0_58, %c0_59] : memref<1x3x2x128xf32, #tpu.memory_space<vmem>>, vector<1x1x2x128xf32>
    %183 = vector.shape_cast %182 : vector<1x1x2x128xf32> to vector<2x128xf32>
    %184 = vector.shape_cast %172 : vector<2x128xf32> to vector<1x1x2x128xf32>
    tpu.vector_store %arg5[%c0_56, %c0_57, %c0_58, %c0_59], %184 {strides = array<i32>} : memref<1x3x2x128xf32, #tpu.memory_space<vmem>>, vector<1x1x2x128xf32>,
    %c0_60 = arith.constant 0 : index
    %c1_61 = arith.constant 1 : index
    %c0_62 = arith.constant 0 : index
    %c0_63 = arith.constant 0 : index
    %185 = vector.load %arg5[%c0_60, %c1_61, %c0_62, %c0_63] : memref<1x3x2x128xf32, #tpu.memory_space<vmem>>, vector<1x1x2x128xf32>
    %186 = vector.shape_cast %185 : vector<1x1x2x128xf32> to vector<2x128xf32>
    %187 = vector.shape_cast %176 : vector<2x128xf32> to vector<1x1x2x128xf32>
    tpu.vector_store %arg5[%c0_60, %c1_61, %c0_62, %c0_63], %187 {strides = array<i32>} : memref<1x3x2x128xf32, #tpu.memory_space<vmem>>, vector<1x1x2x128xf32>,
    %c0_64 = arith.constant 0 : index
    %c2_65 = arith.constant 2 : index
    %c0_66 = arith.constant 0 : index
    %c0_67 = arith.constant 0 : index
    %188 = vector.load %arg5[%c0_64, %c2_65, %c0_66, %c0_67] : memref<1x3x2x128xf32, #tpu.memory_space<vmem>>, vector<1x1x2x128xf32>
    %189 = vector.shape_cast %188 : vector<1x1x2x128xf32> to vector<2x128xf32>
    %190 = vector.shape_cast %181 : vector<2x128xf32> to vector<1x1x2x128xf32>
    tpu.vector_store %arg5[%c0_64, %c2_65, %c0_66, %c0_67], %190 {strides = array<i32>} : memref<1x3x2x128xf32, #tpu.memory_space<vmem>>, vector<1x1x2x128xf32>,
    return
  }
  func.func @transform_0(%arg0: i32, %arg1: i32) -> i32 {
    %c0_i32 = arith.constant 0 : i32
    %c0_i32_0 = arith.constant 0 : i32
    return %c0_i32 : i32
  }
  func.func @transform_1(%arg0: i32, %arg1: i32) -> i32 {
    %c0_i32 = arith.constant 0 : i32
    %c0_i32_0 = arith.constant 0 : i32
    return %c0_i32 : i32
  }
  func.func @transform_2(%arg0: i32, %arg1: i32) -> (i32, i32, i32, i32) {
    %c0_i32 = arith.constant 0 : i32
    %c0_i32_0 = arith.constant 0 : i32
    %c0_i32_1 = arith.constant 0 : i32
    return %arg0, %c0_i32, %arg1, %c0_i32_0 : i32, i32, i32, i32
  }
  func.func @transform_3(%arg0: i32, %arg1: i32) -> (i32, i32, i32, i32) {
    %c0_i32 = arith.constant 0 : i32
    %c0_i32_0 = arith.constant 0 : i32
    %c0_i32_1 = arith.constant 0 : i32
    return %arg0, %c0_i32, %arg1, %c0_i32_0 : i32, i32, i32, i32
  }
}

</mosaic_0001>

<bundles_post_ra>
// kernel: tpu_custom_call.1
= control target key start
LH: loop header
LB: loop body
LE: loop exit
PB: predicated region body
PF: predicated region fallthrough
CT: control target
= control target key end

     0   :  { %8 = vsyncpa [#allocation5], 0  ;;  %s1069_s0 = inlined_call_operand.hbm [shape: f32[4], index: 0, kind: input, shape index: {}]   ;;  %s1070_s1 = inlined_call_operand.vmem [shape: f32[2], index: 1, kind: input, shape index: {}]   ;;  %s1071_s2 = inlined_call_operand.hbm [shape: f32[2,3,2,128], index: 2, kind: input, shape index: {}]   ;;  %s1072_s3 = inlined_call_operand.hbm [shape: f32[2,3,2,128], index: 3, kind: output, shape index: {}]  }
   0x1   :  { %9 = vsyncpa [#allocation6], 0 }
   0x2   :  { %10 = vsyncpa [#allocation3], 0 }
   0x3   :  { %12 = vsyncpa [#allocation3 + $0x1], 0 }
   0x4   :  { %13 = vsyncpa [#allocation4], 0 }
   0x5   :  { %15 = vsyncpa [#allocation4 + $0x1], 0  ;;  %s783_s12 = smov 0   ;;  %s785_s13 = smov 0  }
   0x6   :  { %s787_s14 = smov 0   ;;  %s789_s15 = smov 0  }
   0x7   :  { %s791_s16 = smov 0   ;;  %s793_s17 = smov 0  }
   0x8 LB: > { %s488_s18 = sadd.s32 4294967295, %s752_s17   ;;  %s489_s19 = sadd.s32 4294967294, %s752_s17   ;;  %s752_s17 = sphi %s793_s17, %s21_s17   ;;  %s748_s16 = sphi %s791_s16, %s1099_s16   ;;  %s744_s15 = sphi %s789_s15, %s1098_s15   ;;  %s740_s14 = sphi %s787_s14, %s1097_s14   ;;  %s736_s13 = sphi %s785_s13, %s1096_s13   ;;  %s732_s12 = sphi %s783_s12, %s1095_s12  }
   0x9   : > { %s84_s20 = sadd.s32 1, %s740_s14  ;;  %p91_p0 = scmp.ne.s32.totalorder %s740_s14, %s736_s13 }
   0xa   : > { %p92_p1 = scmp.eq.s32.totalorder %s752_s17, 0  ;;  %p97_p2 = scmp.ne.s32.totalorder %s736_s13, %s732_s12 }
   0xb   : > { %p821_p3 = scmp.eq.s32.totalorder %s488_s18, 0  ;;  %p123_p4 = scmp.eq.s32.totalorder %s488_s18, 1 }
   0xc   : > { %p93_p5 = por %p92_p1, %p91_p0  ;;  %p129_p6 = scmp.eq.s32.totalorder %s489_s19, 1 }
   0xd   : > { %s1077_s21 = scalar_select %p821_p3, 1, 0 }
   0xe   : > { %p827_p7 = por %p821_p3, %p97_p2  ;;  %p831_p8 = por %p123_p4, %p91_p0 }
   0xf   : > { %p835_p9 = por %p129_p6, %p97_p2  ;;  %p490_p10 = scmp.ge.s32.totalorder %s752_s17, 1 }
  0x10   : > { %s1078_s22 = scalar_select %p827_p7, 1, 0 }
  0x11   : > { %s1079_s23 = scalar_select %p831_p8, 1, 0 }
  0x12   : > { %s1080_s24 = scalar_select %p835_p9, 1, 0 }
  0x13   : > { %p136_p11 = scmp.lt.s32.totalorder %s752_s17, 3  ;;  %p541_p1 = scmp.lt.s32.totalorder %s752_s17, 2 }
  0x14   : > { %s158_s28 = sshll.u32 %s1070_s1, 4  ;;  %s169_s4 = sand.u32 1, %s740_s14   ;;  %s159_s28 = int_to_ptr.vmem [resolvable:$true] %s158_s28 }
  0x15   : > { %p842_p13 = pnand %p490_p10, %p136_p11  ;;  %p852_p4 = pnand %p541_p1, %p93_p5 }
  0x16   : > { %s33_s5 = sadd.s32 1, %s748_s16  ;;  %s604_s8 = scalar_lea.hbm %s1069_s0, 16 }
  0x17   : > { %p524_p0 = pneg %p842_p13  ;;  %p605_p5 = scmp.ne.s32.totalorder %s1069_s0, %s604_s8 }
  0x18   : > { %p611_p1 = scmp.lt.u32.totalorder %s604_s8, %s1069_s0 }
  0x19   : > { %p858_p2 = pnand %p524_p0, %p821_p3 }
  0x1b   : > { %p606_p6 = pneg %p858_p2 }
  0x1d   : > { %p607_p10 = pnand %p606_p6, %p605_p5 }
  0x1f   : > { %p608_p11 = pneg %p607_p10 }
  0x21   : > { %p613_p0 = pnand %p611_p1, %p608_p11 }
  0x23   : > { %616 = shalt.err (!%p613_p0)
}
  0x24   : > { %s754_s19 = smov [#allocation2]   ;;  %s617_s6 = scalar_lea.vmem %s159_s28, 16 }
  0x25   : > { %527 = dma.hbm_to_smem (!%p858_p2), %s1069_s0, 16, %s754_s19, [#allocation5]  }
  0x26   : > { %p618_p12 = scmp.ne.s32.totalorder %s159_s28, %s617_s6  ;;  %p625_p7 = scmp.lt.s32.totalorder %s159_s28, %s159_s28 }
  0x27   : > { %p626_p5 = scmp.lt.s32.totalorder %s617_s6, %s617_s6 }
  0x28   : > { %p620_p9 = pnand %p618_p12, %p606_p6 }
  0x29   : > { %p627_p10 = por %p626_p5, %p625_p7 }
  0x2a   : > { %p621_p8 = pneg %p620_p9 }
  0x2c   : > { %p628_p3 = pnand %p627_p10, %p621_p8 }
  0x2e   : > { %631 = shalt.err (!%p628_p3)
}
  0x2f   : > { %s755_s7 = smov [#allocation7]   ;;  %p35_p11 = scmp.ge.s32.totalorder %s33_s5, 2 }
  0x30   : > { %530 = dma.vmem_to_smem (!%p858_p2), %s159_s28, 16, %s755_s7, [#allocation6]  }
  0x31   : > { %s508_s8 = smul.u32 6, %s169_s4  ;;  %s1101_s5 = smov (%p35_p11, %s33_s5), 0 }
  0x32   : > { %s509_s9 = smul.u32 96, %s748_s16  ;;  %s79_s10 = ssub.s32 %s748_s16, %s1101_s5 }
  0x33   : > { %s173_s11 = scalar_lea.vmem [#allocation8], %s508_s8  ;;  %p82_p3 = scmp.eq.s32.totalorder %s79_s10, 0 }
  0x34   : > { %s181_s18 = sshll.u32 %s173_s11, 4  ;;  %s892_s26 = scalar_lea.hbm %s1071_s2, %s509_s9  ;;  %s894_s18 = int_to_ptr.vmem [resolvable:$true] %s181_s18 }
  0x35   : > { %s899_s28 = scalar_select %p82_p3, %s740_s14, %s84_s20  }
  0x36   : > { %s903_s27 = scalar_lea.sflag [#allocation3], %s169_s4  ;;  %s632_s6 = scalar_lea.hbm %s892_s26, 96 }
  0x37   : > { %p633_p7 = scmp.ne.s32.totalorder %s892_s26, %s632_s6  ;;  %p634_p8 = pneg %p852_p4 }
  0x38   : > { %s637_s9 = scalar_lea.hbm %s1071_s2, 192  ;;  %p638_p2 = scmp.lt.u32.totalorder %s892_s26, %s1071_s2 }
  0x39   : > { %p635_p9 = pnand %p634_p8, %p633_p7  ;;  %p639_p6 = scmp.lt.u32.totalorder %s637_s9, %s632_s6 }
  0x3a   : > { %p641_p0 = scmp.lt.u32.totalorder %s632_s6, %s892_s26 }
  0x3b   : > { %p636_p12 = pneg %p635_p9  ;;  %p640_p1 = por %p639_p6, %p638_p2 }
  0x3d   : > { %p642_p5 = por %p641_p0, %p640_p1 }
  0x3f   : > { %p643_p10 = pnand %p642_p5, %p636_p12 }
  0x41   : > { %646 = shalt.err (!%p643_p10)
}
  0x42   : > { %s647_s20 = scalar_lea.vmem %s894_s18, 96  ;;  %s756_s4 = smov [#allocation8]  }
  0x43   : > { %p648_p11 = scmp.ne.s32.totalorder %s894_s18, %s647_s20  ;;  %s652_s30 = sshll.u32 %s756_s4, 4  ;;  %s653_s30 = int_to_ptr.vmem [resolvable:$false] %s652_s30 }
  0x44   : > { %s654_s19 = scalar_lea.vmem %s653_s30, 192  ;;  %p655_p9 = scmp.lt.s32.totalorder %s894_s18, %s653_s30 }
  0x45   : > { %p650_p3 = pnand %p648_p11, %p634_p8  ;;  %p656_p2 = scmp.lt.s32.totalorder %s654_s19, %s647_s20 }
  0x47   : > { %p651_p7 = pneg %p650_p3  ;;  %p657_p6 = por %p656_p2, %p655_p9 }
  0x49   : > { %p658_p1 = pnand %p657_p6, %p651_p7 }
  0x4b   : > { %661 = shalt.err (!%p658_p1)
}
  0x4c   : > { %s757_s6 = smov 32   ;;  %s758_s7 = smov 2  }
  0x4d   : > { %534 = dma.hbm_to_vmem [thread:$0]  (!%p852_p4), %s892_s26, 96, %s894_s18, %s903_s27, %s757_s6, %s757_s6, %s758_s7  }
  0x4e   : > { %193 = sbr.rel (%p842_p13) target bundleno = 200 (0xc8), region = 32  ;;  %p1084_p8 = scmp.ne.s32.totalorder (!%p842_p13), %s1077_s21, 0 }
  0x55   : > { %715 = dma.done.wait (%p1084_p8), [#allocation5], 16  }
  0x56   : > { %717 = vsyncadd (%p1084_p8), [#allocation5], 4294967280 }
  0x57   : > { %719 = dma.done.wait (%p1084_p8), [#allocation6], 16  }
  0x58   : > { %721 = vsyncadd (%p1084_p8), [#allocation6], 4294967280  ;;  %s942_s8 = sand.u32 1, %s736_s13   ;;  %p1085_p13 = scmp.ne.s32.totalorder %s1078_s22, 0 }
  0x59   : > { %s510_s25 = smul.u32 6, %s942_s8  ;;  %s204_s29 = scalar_lea.sflag [#allocation3], %s942_s8 }
  0x5b   : > { %s207_s18 = scalar_lea.vmem [#allocation8], %s510_s25 }
  0x5c   : > { %723 = dma.done.wait (%p1085_p13), %s204_s29, 96  }
  0x5d   : > { %725 = vsyncadd (%p1085_p13), %s204_s29, 4294967200 }
  0x5e   : > { %212 = sfence }
  0x5f   : > { %s231_s26 = sld [smem:[#allocation2]]  ;;  %s498_s21 = sld [smem:[#allocation2 + $0x1]]  ;;  %v236_v0 = vld [vmem:[%s207_s18] sm:$0x3]  ;;  %v501_v1 = vld [vmem:[%s207_s18 + $0x2] sm:$0x3] }
  0x60   : > { %s235_s27 = sld [smem:[#allocation7 + %s744_s15]]  ;;  %v502_v2 = vld [vmem:[%s207_s18 + $0x4] sm:$0x3]  ;;  %vm759_vm3 = vmmov 1   ;;  %s230_s30 = scalar_lea.vmem [#allocation9], %s510_s25 }
  0x61   : > { %s499_s22 = sld [smem:[#allocation2 + $0x2]]  ;;  %s500_s20 = sld [smem:[#allocation2 + $0x3]] }
  0x62   : > { %s379_s19 = sshll.u32 %s230_s30, 4  ;;  %s511_s6 = smul.u32 96, %s744_s15  ;;  %s1012_s19 = int_to_ptr.vmem [resolvable:$true] %s379_s19 }
  0x63   : > { %s365_s29 = scalar_lea.sflag [#allocation4], %s942_s8  ;;  %s662_s18 = scalar_lea.vmem %s1012_s19, 96 }
  0x64   : > { %s1018_s25 = scalar_lea.hbm %s1072_s3, %s511_s6  ;;  %p663_p4 = scmp.ne.s32.totalorder %s1012_s19, %s662_s18 }
  0x65   : > { %v241_v3 = vstv %s231_s26  ;;  %s251_s9 = ssub.f32 1.0, %s498_s21  ;;  %v253_v10 = vstv %s498_s21  ;;  %p1092_p12 = scmp.ne.s32.totalorder %s1079_s23, 0 }
  0x66   : > { %v242_v4 = vmul.f32 %v241_v3, %v236_v0  ;;  %v245_v5 = vmul.f32 %v501_v1, %v241_v3  ;;  %v248_v6 = vmul.f32 %v502_v2, %v241_v3  ;;  %s760_s26 = smov [#allocation9]  }
  0x67   : > { %s252_s10 = smul.f32 %s251_s9, %s235_s27  ;;  %s272_s11 = ssub.f32 1.0, %s499_s22  ;;  %v273_v30 = vstv %s499_s22 }
  0x68   : > { %v243_v7 = vmax.f32 %v242_v4, 0.0  ;;  %v246_v8 = vmax.f32 %v245_v5, 0.0  ;;  %v249_v9 = vmax.f32 %v248_v6, 0.0  ;;  %s323_s4 = sadd.f32 1.0, %s500_s20  ;;  %p664_p0 = pnand %p663_p4, %p1092_p12 }
  0x69   : > { %v255_v14 = vstv %s252_s10  ;;  %v275_v32 = vstv %s272_s11  ;;  %s666_s21 = sshll.u32 %s760_s26, 4  ;;  %s667_s21 = int_to_ptr.vmem [resolvable:$false] %s666_s21 }
  0x6a   : > { %v244_v11 = vmin.f32 %v243_v7, 1.0  ;;  %v247_v12 = vmin.f32 %v246_v8, 1.0  ;;  %v250_v13 = vmin.f32 %v249_v9, 1.0  ;;  %v324_v8 = vstv %s323_s4  ;;  %p665_p5 = pneg %p664_p0  ;;  %s668_s27 = scalar_lea.vmem %s667_s21, 192 }
  0x6b   : > { %p669_p10 = scmp.lt.s32.totalorder %s1012_s19, %s667_s21  ;;  %p670_p11 = scmp.lt.s32.totalorder %s668_s27, %s662_s18 }
  0x6c   : > { %v254_v15 = vmul.f32 %v253_v10, %v244_v11  ;;  %v259_v16 = vmul.f32 %v253_v10, %v247_v12  ;;  %v263_v17 = vmul.f32 %v253_v10, %v250_v13 }
  0x6d   : > { %p671_p3 = por %p670_p11, %p669_p10 }
  0x6e   : > { %v256_v18 = vadd.f32 %v255_v14, %v254_v15  ;;  %v260_v19 = vadd.f32 %v259_v16, %v255_v14  ;;  %v264_v20 = vadd.f32 %v263_v17, %v255_v14 }
  0x6f   : > { %p672_p7 = pnand %p671_p3, %p665_p5 }
  0x70   : > { %v257_v21 = vmax.f32 %v256_v18, 0.0  ;;  %v261_v22 = vmax.f32 %v260_v19, 0.0  ;;  %v265_v23 = vmax.f32 %v264_v20, 0.0 }
  0x72   : > { %v258_v24 = vmin.f32 %v257_v21, 1.0  ;;  %v262_v25 = vmin.f32 %v261_v22, 1.0  ;;  %v266_v26 = vmin.f32 %v265_v23, 1.0 }
  0x74   : > { %v267_v27 = vmul.f32 0.2989, %v258_v24  ;;  %v268_v28 = vmul.f32 0.587, %v262_v25  ;;  %v270_v29 = vmul.f32 0.114, %v266_v26  ;;  %v274_v34 = vmul.f32 %v273_v30, %v258_v24 }
  0x75   : > { %v280_v35 = vmul.f32 %v273_v30, %v262_v25  ;;  %v284_v36 = vmul.f32 %v273_v30, %v266_v26 }
  0x76   : > { %v269_v31 = vadd.f32 %v268_v28, %v267_v27 }
  0x78   : > { %v271_v33 = vadd.f32 %v270_v29, %v269_v31 }
  0x7a   : > { %v276_v37 = vmul.f32 %v275_v32, %v271_v33 }
  0x7c   : > { %v277_v38 = vadd.f32 %v276_v37, %v274_v34  ;;  %v281_v39 = vadd.f32 %v280_v35, %v276_v37  ;;  %v285_v40 = vadd.f32 %v284_v36, %v276_v37 }
  0x7e   : > { %v278_v41 = vmax.f32 %v277_v38, 0.0  ;;  %v282_v42 = vmax.f32 %v281_v39, 0.0  ;;  %v286_v43 = vmax.f32 %v285_v40, 0.0 }
  0x80   : > { %v279_v44 = vmin.f32 %v278_v41, 1.0  ;;  %v283_v45 = vmin.f32 %v282_v42, 1.0  ;;  %v287_v46 = vmin.f32 %v286_v43, 1.0 }
  0x82   : > { %v288_v47 = vmax.f32 %v279_v44, %v283_v45  ;;  %v290_v48 = vmin.f32 %v279_v44, %v283_v45 }
  0x84   : > { %v953_v49 = vmax.f32 %v288_v47, %v287_v46  ;;  %v291_v50 = vmin.f32 %v290_v48, %v287_v46 }
  0x86   : > { %vm292_vm0 = vcmp.eq.f32.partialorder %v953_v49, %v291_v50  ;;  %v293_v51 = vsub.f32 %v953_v49, %v291_v50  ;;  %v300_v53 = vsub.f32 %v953_v49, %v279_v44  ;;  %v302_v54 = vsub.f32 %v953_v49, %v283_v45 }
  0x87   : > { %v304_v55 = vsub.f32 %v953_v49, %v287_v46  ;;  %vm306_vm1 = vcmp.eq.f32.partialorder %v953_v49, %v279_v44  ;;  %vm307_vm2 = vcmp.eq.f32.partialorder %v953_v49, %v283_v45  ;;  %v294_v61 = vsel %vm292_vm0, 1.0, %v953_v49 }
  0x88   : > { %v298_v52 = vsel %vm292_vm0, 1.0, %v293_v51  ;;  %vm966_vm4 = vmxor %vm306_vm1, %vm759_vm3 }
  0x89   : > { %600 = vrcp.f32 %v298_v52  ;;  %vm315_vm5 = vmxor %vm307_vm2, %vm759_vm3 }
  0x8a   : > { %vm311_vm6 = vmand %vm307_vm2, %vm966_vm4  ;;  %602 = vrcp.f32 %v294_v61 }
  0x8b   : > { %vm316_vm7 = vmand %vm315_vm5, %vm966_vm4 }
  0x93   : > { %v601_v56 = vpop.eup %600 }
  0x94   : > { %v301_v58 = vmul.f32 %v601_v56, %v300_v53  ;;  %v303_v59 = vmul.f32 %v601_v56, %v302_v54  ;;  %v305_v60 = vmul.f32 %v601_v56, %v304_v55  ;;  %v603_v11 = vpop.eup %602 }
  0x95   : > { %v296_v13 = vmul.f32 %v603_v11, %v293_v51 }
  0x96   : > { %v308_v62 = vsub.f32 %v305_v60, %v303_v59  ;;  %v312_v63 = vadd.f32 2.0, %v301_v58  ;;  %v317_v0 = vadd.f32 4.0, %v303_v59 }
  0x97   : > { %v297_v16 = vmin.f32 %v296_v13, 1.0 }
  0x98   : > { %v309_v1 = vsel %vm306_vm1, %v308_v62, 0.0  ;;  %v313_v2 = vsub.f32 %v312_v63, %v305_v60  ;;  %v318_v3 = vsub.f32 %v317_v0, %v301_v58 }
  0x99   : > { %v331_v19 = vsub.f32 1.0, %v297_v16 }
  0x9a   : > { %v314_v4 = vsel %vm311_vm6, %v313_v2, 0.0  ;;  %v319_v5 = vsel %vm316_vm7, %v318_v3, 0.0 }
  0x9b   : > { %v320_v6 = vadd.f32 %v314_v4, %v309_v1  ;;  %v332_v22 = vmul.f32 %v331_v19, %v953_v49 }
  0x9d   : > { %v321_v7 = vadd.f32 %v320_v6, %v319_v5 }
  0x9f   : > { %v322_v9 = vmul.f32 0.16666667, %v321_v7 }
  0xa1   : > { %v325_v10 = vadd.f32 %v324_v8, %v322_v9 }
  0xa3   : > { %v326_v12 = vfloor.f32 %v325_v10 }
  0xa5   : > { %v327_v14 = vsub.f32 %v325_v10, %v326_v12 }
  0xa7   : > { %v328_v15 = vmul.f32 6.0, %v327_v14 }
  0xa9   : > { %v329_v17 = vfloor.f32 %v328_v15 }
  0xab   : > { %v330_v18 = vsub.f32 %v328_v15, %v329_v17  ;;  %vm343_vm8 = vcmp.eq.f32.partialorder %v329_v17, 3.0  ;;  %vm344_vm9 = vcmp.eq.f32.partialorder %v329_v17, 4.0  ;;  %vm341_vm10 = vcmp.eq.f32.partialorder %v329_v17, 1.0 }
  0xac   : > { %vm342_vm11 = vcmp.eq.f32.partialorder %v329_v17, 2.0  ;;  %vm340_vm12 = vcmp.eq.f32.partialorder %v329_v17, 0.0  ;;  %vm982_vm13 = vmor %vm343_vm8, %vm344_vm9 }
  0xad   : > { %v333_v20 = vmul.f32 %v330_v18, %v297_v16  ;;  %v336_v21 = vsub.f32 1.0, %v330_v18  ;;  %vm350_vm14 = vmor %vm341_vm10, %vm342_vm11 }
  0xae   : > { %vm991_vm15 = vmor %vm342_vm11, %vm343_vm8 }
  0xaf   : > { %v334_v23 = vsub.f32 1.0, %v333_v20  ;;  %v337_v24 = vmul.f32 %v336_v21, %v297_v16  ;;  %vm354_vm0 = vmor %vm340_vm12, %vm341_vm10 }
  0xb1   : > { %v335_v26 = vmul.f32 %v334_v23, %v953_v49  ;;  %v338_v27 = vsub.f32 1.0, %v337_v24 }
  0xb3   : > { %v339_v29 = vmul.f32 %v338_v27, %v953_v49  ;;  %v351_v30 = vsel %vm343_vm8, %v335_v26, %v332_v22  ;;  %v356_v31 = vsel %vm982_vm13, %v953_v49, %v335_v26 }
  0xb4   : > { %v352_v32 = vsel %vm350_vm14, %v953_v49, %v351_v30 }
  0xb5   : > { %v346_v33 = vsel %vm344_vm9, %v339_v29, %v953_v49  ;;  %v353_v34 = vsel %vm340_vm12, %v339_v29, %v352_v32  ;;  %v357_v35 = vsel %vm342_vm11, %v339_v29, %v356_v31 }
  0xb6   : > { %v347_v36 = vsel %vm991_vm15, %v332_v22, %v346_v33  ;;  %503 = vst [vmem:[%s230_s30 + $0x2] sm:$0x3] %v353_v34  ;;  %v358_v37 = vsel %vm354_vm0, %v332_v22, %v357_v35 }
  0xb7   : > { %v348_v38 = vsel %vm341_vm10, %v335_v26, %v347_v36  ;;  %504 = vst [vmem:[%s230_s30 + $0x4] sm:$0x3] %v358_v37 }
  0xb8   : > { %v349_v39 = vsel %vm340_vm12, %v953_v49, %v348_v38 }
  0xb9   : > { %359 = vst [vmem:[%s230_s30] sm:$0x3] %v349_v39 }
  0xba   : > { %675 = shalt.err (!%p672_p7)
}
  0xbb   : > { %s676_s9 = scalar_lea.hbm %s1018_s25, 96  ;;  %s680_s11 = scalar_lea.hbm %s1072_s3, 192 }
  0xbc   : > { %p677_p9 = scmp.ne.s32.totalorder %s1018_s25, %s676_s9  ;;  %p681_p1 = scmp.lt.u32.totalorder %s1018_s25, %s1072_s3 }
  0xbd   : > { %p682_p8 = scmp.lt.u32.totalorder %s680_s11, %s676_s9  ;;  %p684_p4 = scmp.lt.u32.totalorder %s676_s9, %s1018_s25 }
  0xbe   : > { %p678_p2 = pnand %p677_p9, %p1092_p12 }
  0xbf   : > { %p683_p13 = por %p682_p8, %p681_p1 }
  0xc0   : > { %p679_p6 = pneg %p678_p2 }
  0xc1   : > { %p685_p0 = por %p684_p4, %p683_p13 }
  0xc3   : > { %p686_p5 = pnand %p685_p0, %p679_p6 }
  0xc5   : > { %689 = shalt.err (!%p686_p5)
}
  0xc6   : > { %s761_s30 = smov 32   ;;  %s762_s6 = smov 2  }
  0xc7   : > { %522 = dma.vmem_to_hbm [thread:$0]  (%p1092_p12), %s1012_s19, 96, %s1018_s25, %s365_s29, %s761_s30, %s761_s30, %s762_s6  }
  0xc8 PF: > { %s394_s15 = sand.u32 1, %s732_s12   ;;  %p1093_p10 = scmp.ne.s32.totalorder %s1080_s24, 0 }
  0xc9   : > { %p1094_p11 = scmp.ge.s32.totalorder %s752_s17, 2  ;;  %s395_s7 = scalar_lea.sflag [#allocation4], %s394_s15 }
  0xcb   : > { %p536_p3 = pnand %p1094_p11, %p1093_p10 }
  0xcd   : > { %727 = dma.done.wait (!%p536_p3), %s395_s7, 96  }
  0xce   : > { %729 = vsyncadd (!%p536_p3), %s395_s7, 4294967200  ;;  %s21_s17 = sadd.s32 1, %s752_s17   ;;  %s1095_s12 = smov %s736_s13 }
  0xcf   : > { %p18_p7 = scmp.ge.s32.totalorder %s21_s17, 4   ;;  %s1096_s13 = smov %s740_s14 }
  0xd0   : > { %s1097_s14 = smov %s899_s28  ;;  %s1098_s15 = smov %s748_s16 }
  0xd1   : > { %s1099_s16 = smov %s1101_s5  ;;  %20 = sbr.rel (!%p18_p7) target bundleno = 8 (0x8), region = 91 }
  0xd8   :  { %400 = vsyncpa [#allocation3], 1 }
  0xd9   :  { %402 = vsyncpa [#allocation3 + $0x1], 1 }
  0xda   :  { %403 = vsyncpa [#allocation4], 1 }
  0xdb   :  { %405 = vsyncpa [#allocation4 + $0x1], 1 }
  0xdc   :  { %406 = vsyncpa [#allocation5], 1 }
  0xdd   :  { %408 = vsyncpa [#allocation5 + $0x1], 1 }
  0xde   :  { %409 = vsyncpa [#allocation6], 1 }
  0xdf   :  { %411 = vsyncpa [#allocation6 + $0x1], 1 }

</bundles_post_ra>
